<compile_context>
chip_gen: v5e
topology: v5e:2x2
jax: 0.10.0
libtpu: 0.0.40
codegen_flags: <defaults>
</compile_context>

<pallas_src>
import jax
import jax.numpy as jnp
from jax import lax
from jax.experimental import pallas as pl
from jax.experimental.pallas import tpu as pltpu


def _round_up(x, m):
    return ((x + m - 1) // m) * m


# ---------------------------------------------------------------------------
# Kernel: one (Bt, *) sublane-tile of samples per grid step.
# ---------------------------------------------------------------------------
def _musical_kernel(idx_ref, f_ref, xb_ref, whh_ref, zb_ref,
                    wall_ref, ssel_ref, bfc_ref, out_ref):
    Lc = xb_ref.shape[0]                  # conv output length (static)
    Bt = f_ref.shape[0]                   # samples per grid step (static)

    idx = idx_ref[...]                    # (Bt, 1) int32 per-sample index
    fstate = f_ref[...]                   # (Bt, 8) gathered forward states
    whh = whh_ref[...]                    # (8, 8)  = b_whh.T (loop invariant)

    # Backward recurrence over GLOBAL positions p = 1 .. Lc-1.  Every active
    # sample consumes the SAME input row xb[p] (bias already folded in); a
    # sample with index i becomes active at p == i+1, at which point its
    # carried state is still the zero init, so its first committed step sees
    # h = 0 exactly as in the reference.
    def step(p, h):
        xrow = xb_ref[pl.ds(p, 1), :]                                  # (1, 8)
        cand = jnp.tanh(xrow + jnp.dot(h, whh,
                                       preferred_element_type=jnp.float32))
        started = (idx < p).astype(jnp.float32)                        # (Bt, 1)
        return started * cand + (1.0 - started) * h

    h0 = jnp.zeros((Bt, 8), jnp.float32)
    bstate = lax.fori_loop(1, Lc, step, h0, unroll=True)               # (Bt, 8)

    # index + 1 >= Lc  ->  b_part := zeros(8,1)  ->  single zero-input step.
    use_z = ((idx + 1) >= Lc).astype(jnp.float32)                      # (Bt, 1)
    bstate = use_z * zb_ref[...] + (1.0 - use_z) * bstate              # (Bt, 8)

    # 4-head epilogue:  out[s, k] = fstate[s] @ Wk @ bstate[s] + b_fc[k]
    #   tmp1[s, 8k+j] = (fstate[s] @ Wk)[j]        (one (Bt,8)@(8,32) matmul)
    #   tmp2[s, 8k+j] = bstate[s, j]               (pure lane tile, no MXU hop)
    tmp1 = jnp.dot(fstate, wall_ref[...], preferred_element_type=jnp.float32)
    tmp2 = jnp.tile(bstate, (1, 4))                                    # (Bt, 32)
    out_ref[...] = (jnp.dot(tmp1 * tmp2, ssel_ref[...],
                            preferred_element_type=jnp.float32)
                    + bfc_ref[...])                                    # (Bt, 4)


# ---------------------------------------------------------------------------
# Wrapper-side (plain XLA) piece-only precompute + pallas_call plumbing.
# ---------------------------------------------------------------------------
def _precompute(piece, params):
    (w_conv, b_conv, f_wih, f_whh, f_bih, f_bhh,
     b_wih, b_whh, b_bih, b_bhh, w_fc, b_fc) = params
    L = piece.shape[0]
    Lc = L - 1

    # Conv1d(4,8,2): conv[t] = piece[t]@W0^T + piece[t+1]@W1^T + b
    conv = (piece[:-1] @ w_conv[:, :, 0].T
            + piece[1:] @ w_conv[:, :, 1].T
            + b_conv[None, :])                                        # (Lc, 8)

    # Shared forward-RNN prefix: f_last(index=i) = state after i steps (i>=1);
    # index==0 uses a single zero-input step.  Build a (Lc,8) lookup table.
    xf = conv @ f_wih.T + (f_bih + f_bhh)[None, :]                    # (Lc, 8)

    def fstep(h, x):
        h = jnp.tanh(x + h @ f_whh.T)
        return h, h

    _, fstates = lax.scan(fstep, jnp.zeros((8,), jnp.float32), xf[:Lc - 1])
    f_hist = jnp.concatenate(
        [jnp.tanh(f_bih + f_bhh)[None, :], fstates], axis=0)          # (Lc, 8)

    # Backward-RNN input rows (channel flip of b_part and biases folded in).
    xb = conv @ b_wih[:, ::-1].T + (b_bih + b_bhh)[None, :]           # (Lc, 8)
    zb = jnp.tanh(b_bih + b_bhh)[None, :]                             # (1, 8)
    whh_t = b_whh.T                                                   # (8, 8)

    # Packed 4-head weights:  w_all[i, 8k+j] = w_fc[k, 8i+j]
    w_all = jnp.transpose(w_fc.reshape(4, 8, 8), (1, 0, 2)).reshape(8, 32)
    ssel = jnp.repeat(jnp.eye(4, dtype=jnp.float32), 8, axis=0)       # (32, 4)
    bfc = b_fc.reshape(1, 4)
    return f_hist, xb, whh_t, zb, w_all, ssel, bfc


@jax.jit
def _forward_impl(piece, indices, params):
    L = piece.shape[0]
    Lc = L - 1
    B = indices.shape[0]
    f_hist, xb, whh_t, zb, w_all, ssel, bfc = _precompute(piece, params)

    # Sublane batch: multiple of 8 (sublane granularity), capped at 128 so the
    # recurrence matmul fills the MXU height without blowing the vreg budget.
    Bt = min(128, _round_up(B, 8))
    Bpad = _round_up(B, Bt)
    idx_pad = jnp.zeros((Bpad,), jnp.int32).at[:B].set(indices)
    idx_col = idx_pad.reshape(Bpad, 1)
    fgather = jnp.take(f_hist, jnp.clip(idx_pad, 0, Lc - 1), axis=0)  # (Bpad, 8)

    full = lambda b: (0, 0)
    out = pl.pallas_call(
        _musical_kernel,
        out_shape=jax.ShapeDtypeStruct((Bpad, 4), jnp.float32),
        grid_spec=pltpu.PrefetchScalarGridSpec(
            num_scalar_prefetch=0,
            grid=(Bpad // Bt,),
            in_specs=[
                pl.BlockSpec((Bt, 1), lambda b: (b, 0)),   # per-sample index
                pl.BlockSpec((Bt, 8), lambda b: (b, 0)),   # gathered f_last
                pl.BlockSpec(xb.shape, full),              # bwd input rows
                pl.BlockSpec(whh_t.shape, full),           # bwd hidden weight
                pl.BlockSpec(zb.shape, full),              # bwd zero-input state
                pl.BlockSpec(w_all.shape, full),           # packed head weights
                pl.BlockSpec(ssel.shape, full),            # group-sum selector
                pl.BlockSpec(bfc.shape, full),             # head biases
            ],
            out_specs=pl.BlockSpec((Bt, 4), lambda b: (b, 0)),
        ),
        compiler_params=pltpu.CompilerParams(
            dimension_semantics=("parallel",)),
    )(idx_col, fgather, xb, whh_t, zb, w_all, ssel, bfc)
    return out[:B]


def musical_model_forward_batched(piece, indices, params):
    """piece: (L, 4) f32, indices: (B,) int -> (B, 4) f32."""
    return _forward_impl(jnp.asarray(piece, jnp.float32),
                         jnp.asarray(indices, jnp.int32), params)


def musical_model_forward(piece, index, params):
    """Single-sample forward: piece (L, 4) f32, index scalar -> (4,) f32."""
    return musical_model_forward_batched(
        piece, jnp.asarray([index], jnp.int32), params).reshape(4)


def reference_forward(piece, index, params):
    """Pure-JAX transcription of the PyTorch forward (index is a python int)."""
    (w_conv, b_conv, f_wih, f_whh, f_bih, f_bhh,
     b_wih, b_whh, b_bih, b_bhh, w_fc, b_fc) = params
    windows = jnp.stack([piece[:-1, :], piece[1:, :]], axis=2)           # (Lc,4,2)
    conv = jnp.einsum('ock,tck->ot', w_conv, windows) + b_conv[:, None]  # (8, Lc)
    Lc = conv.shape[1]

    if index == 0:
        f_part = jnp.zeros((8, 1), jnp.float32)
    else:
        f_part = conv[:, :index]
    if index + 1 >= Lc:
        b_part = jnp.zeros((8, 1), jnp.float32)
    else:
        b_part = conv[:, index + 1:][::-1, :]            # flip along channel dim

    def run_rnn(seq, wih, whh, bih, bhh):                # seq: (T, 8)
        h = jnp.zeros((8,), jnp.float32)
        for t in range(seq.shape[0]):
            h = jnp.tanh(seq[t] @ wih.T + bih + h @ whh.T + bhh)
        return h

    f_last = run_rnn(f_part.T, f_wih, f_whh, f_bih, f_bhh)
    b_last = run_rnn(b_part.T, b_wih, b_whh, b_bih, b_bhh)
    flat = jnp.outer(f_last, b_last).reshape(64)
    return w_fc @ flat + b_fc                            # (4,)


if __name__ == "__main__":
    key = jax.random.PRNGKey(0)
    ks = jax.random.split(key, 14)
    L = 8   # sequence length of `piece`
    Lc = L - 1

    params = (
        0.3 * jax.random.normal(ks[0], (8, 4, 2), jnp.float32),   # conv.weight
        0.1 * jax.random.normal(ks[1], (8,), jnp.float32),        # conv.bias
        0.3 * jax.random.normal(ks[2], (8, 8), jnp.float32),      # f_rnn W_ih
        0.3 * jax.random.normal(ks[3], (8, 8), jnp.float32),      # f_rnn W_hh
        0.1 * jax.random.normal(ks[4], (8,), jnp.float32),        # f_rnn b_ih
        0.1 * jax.random.normal(ks[5], (8,), jnp.float32),        # f_rnn b_hh
        0.3 * jax.random.normal(ks[6], (8, 8), jnp.float32),      # b_rnn W_ih
        0.3 * jax.random.normal(ks[7], (8, 8), jnp.float32),      # b_rnn W_hh
        0.1 * jax.random.normal(ks[8], (8,), jnp.float32),        # b_rnn b_ih
        0.1 * jax.random.normal(ks[9], (8,), jnp.float32),        # b_rnn b_hh
        0.1 * jax.random.normal(ks[10], (4, 64), jnp.float32),    # fc0..fc3 weights
        0.1 * jax.random.normal(ks[11], (4,), jnp.float32),       # fc0..fc3 biases
    )
    piece = jax.random.normal(ks[12], (L, 4), jnp.float32)

    # Single-sample path: exercise the data-dependent branches
    # (index==0, middle, index+1 >= Lc).
    for index in (0, 3, L - 2):
        out = jax.block_until_ready(musical_model_forward(piece, index, params))
        ref = reference_forward(piece, index, params)
        assert out.shape == (4,)
        assert jnp.allclose(out, ref, atol=1e-4, rtol=1e-4), (index, out, ref)

    # Batched path: all indices of the piece in one pallas_call
    # (grid over batch tiles of Bt samples).
    all_idx = jnp.arange(Lc, dtype=jnp.int32)
    batched = jax.block_until_ready(
        musical_model_forward_batched(piece, all_idx, params))
    assert batched.shape == (Lc, 4)
    for i in range(Lc):
        ref = reference_forward(piece, int(i), params)
        assert jnp.allclose(batched[i], ref, atol=1e-4, rtol=1e-4), (i, batched[i], ref)

    print("KERNEL_OK")
</pallas_src>

<mosaic_0001>
module attributes {stable_mosaic.version = 11 : i64} {
  func.func @_musical_kernel(%arg0: i32, %arg1: memref<8x1xi32, #tpu.memory_space<vmem>>, %arg2: memref<8x8xf32, #tpu.memory_space<vmem>>, %arg3: memref<7x8xf32, #tpu.memory_space<vmem>>, %arg4: memref<8x8xf32, #tpu.memory_space<vmem>>, %arg5: memref<1x8xf32, #tpu.memory_space<vmem>>, %arg6: memref<8x32xf32, #tpu.memory_space<vmem>>, %arg7: memref<32x4xf32, #tpu.memory_space<vmem>>, %arg8: memref<1x4xf32, #tpu.memory_space<vmem>>, %arg9: memref<8x4xf32, #tpu.memory_space<vmem>>) attributes {dimension_semantics = [#tpu.dimension_semantics<parallel>], iteration_bounds = array<i64: 1>, scalar_prefetch = 0 : i64, scratch_operands = 0 : i64, tpu.core_type = #tpu.core_type<tc>, window_params = [{transform_indices = @transform_0, window_bounds = array<i64: 8, 1>}, {transform_indices = @transform_1, window_bounds = array<i64: 8, 8>}, {pipeline_mode = #tpu.pipeline_mode<synchronous>, transform_indices = @transform_2, window_bounds = array<i64: 7, 8>}, {pipeline_mode = #tpu.pipeline_mode<synchronous>, transform_indices = @transform_3, window_bounds = array<i64: 8, 8>}, {pipeline_mode = #tpu.pipeline_mode<synchronous>, transform_indices = @transform_4, window_bounds = array<i64: 1, 8>}, {pipeline_mode = #tpu.pipeline_mode<synchronous>, transform_indices = @transform_5, window_bounds = array<i64: 8, 32>}, {pipeline_mode = #tpu.pipeline_mode<synchronous>, transform_indices = @transform_6, window_bounds = array<i64: 32, 4>}, {pipeline_mode = #tpu.pipeline_mode<synchronous>, transform_indices = @transform_7, window_bounds = array<i64: 1, 4>}, {transform_indices = @transform_8, window_bounds = array<i64: 8, 4>}]} {
    %c0 = arith.constant 0 : index
    %c0_0 = arith.constant 0 : index
    %0 = vector.load %arg1[%c0, %c0_0] : memref<8x1xi32, #tpu.memory_space<vmem>>, vector<8x1xi32>
    %c0_1 = arith.constant 0 : index
    %c0_2 = arith.constant 0 : index
    %1 = vector.load %arg2[%c0_1, %c0_2] : memref<8x8xf32, #tpu.memory_space<vmem>>, vector<8x8xf32>
    %c0_3 = arith.constant 0 : index
    %c0_4 = arith.constant 0 : index
    %2 = vector.load %arg4[%c0_3, %c0_4] : memref<8x8xf32, #tpu.memory_space<vmem>>, vector<8x8xf32>
    %cst = arith.constant 0.000000e+00 : f32
    %3 = vector.broadcast %cst : f32 to vector<8x8xf32>
    %c1_i32 = arith.constant 1 : i32
    %4 = arith.index_cast %c1_i32 : i32 to index
    %c0_5 = arith.constant 0 : index
    %5 = vector.load %arg3[%4, %c0_5] : memref<7x8xf32, #tpu.memory_space<vmem>>, vector<1x8xf32>
    %cst_6 = arith.constant dense<0.000000e+00> : vector<8x8xf32>
    %6 = tpu.matmul %3, %2, %cst_6 {dimension_numbers = #tpu.dot_dimension_numbers<[1], [0], [0], [1], [0, 0, 1, 1], [], []>} : vector<8x8xf32>, vector<8x8xf32>, vector<8x8xf32> -> vector<8x8xf32>
    %7 = vector.broadcast %5 : vector<1x8xf32> to vector<8x8xf32>
    %8 = arith.addf %7, %6 : vector<8x8xf32>
    %9 = math.tanh %8 : vector<8x8xf32>
    %10 = vector.broadcast %c1_i32 : i32 to vector<8x1xi32>
    %11 = arith.cmpi slt, %0, %10 : vector<8x1xi32>
    %12 = arith.extui %11 : vector<8x1xi1> to vector<8x1xi32>
    %13 = arith.sitofp %12 : vector<8x1xi32> to vector<8x1xf32>
    %14 = vector.broadcast %13 : vector<8x1xf32> to vector<8x8xf32>
    %15 = arith.mulf %14, %9 : vector<8x8xf32>
    %cst_7 = arith.constant 1.000000e+00 : f32
    %16 = vector.broadcast %cst_7 : f32 to vector<8x1xf32>
    %17 = arith.subf %16, %13 : vector<8x1xf32>
    %18 = vector.broadcast %17 : vector<8x1xf32> to vector<8x8xf32>
    %19 = arith.mulf %18, %3 : vector<8x8xf32>
    %20 = arith.addf %15, %19 : vector<8x8xf32>
    %c2_i32 = arith.constant 2 : i32
    %21 = arith.index_cast %c2_i32 : i32 to index
    %c0_8 = arith.constant 0 : index
    %22 = vector.load %arg3[%21, %c0_8] : memref<7x8xf32, #tpu.memory_space<vmem>>, vector<1x8xf32>
    %cst_9 = arith.constant dense<0.000000e+00> : vector<8x8xf32>
    %23 = tpu.matmul %20, %2, %cst_9 {dimension_numbers = #tpu.dot_dimension_numbers<[1], [0], [0], [1], [0, 0, 1, 1], [], []>} : vector<8x8xf32>, vector<8x8xf32>, vector<8x8xf32> -> vector<8x8xf32>
    %24 = vector.broadcast %22 : vector<1x8xf32> to vector<8x8xf32>
    %25 = arith.addf %24, %23 : vector<8x8xf32>
    %26 = math.tanh %25 : vector<8x8xf32>
    %27 = vector.broadcast %c2_i32 : i32 to vector<8x1xi32>
    %28 = arith.cmpi slt, %0, %27 : vector<8x1xi32>
    %29 = arith.extui %28 : vector<8x1xi1> to vector<8x1xi32>
    %30 = arith.sitofp %29 : vector<8x1xi32> to vector<8x1xf32>
    %31 = vector.broadcast %30 : vector<8x1xf32> to vector<8x8xf32>
    %32 = arith.mulf %31, %26 : vector<8x8xf32>
    %cst_10 = arith.constant 1.000000e+00 : f32
    %33 = vector.broadcast %cst_10 : f32 to vector<8x1xf32>
    %34 = arith.subf %33, %30 : vector<8x1xf32>
    %35 = vector.broadcast %34 : vector<8x1xf32> to vector<8x8xf32>
    %36 = arith.mulf %35, %20 : vector<8x8xf32>
    %37 = arith.addf %32, %36 : vector<8x8xf32>
    %c3_i32 = arith.constant 3 : i32
    %38 = arith.index_cast %c3_i32 : i32 to index
    %c0_11 = arith.constant 0 : index
    %39 = vector.load %arg3[%38, %c0_11] : memref<7x8xf32, #tpu.memory_space<vmem>>, vector<1x8xf32>
    %cst_12 = arith.constant dense<0.000000e+00> : vector<8x8xf32>
    %40 = tpu.matmul %37, %2, %cst_12 {dimension_numbers = #tpu.dot_dimension_numbers<[1], [0], [0], [1], [0, 0, 1, 1], [], []>} : vector<8x8xf32>, vector<8x8xf32>, vector<8x8xf32> -> vector<8x8xf32>
    %41 = vector.broadcast %39 : vector<1x8xf32> to vector<8x8xf32>
    %42 = arith.addf %41, %40 : vector<8x8xf32>
    %43 = math.tanh %42 : vector<8x8xf32>
    %44 = vector.broadcast %c3_i32 : i32 to vector<8x1xi32>
    %45 = arith.cmpi slt, %0, %44 : vector<8x1xi32>
    %46 = arith.extui %45 : vector<8x1xi1> to vector<8x1xi32>
    %47 = arith.sitofp %46 : vector<8x1xi32> to vector<8x1xf32>
    %48 = vector.broadcast %47 : vector<8x1xf32> to vector<8x8xf32>
    %49 = arith.mulf %48, %43 : vector<8x8xf32>
    %cst_13 = arith.constant 1.000000e+00 : f32
    %50 = vector.broadcast %cst_13 : f32 to vector<8x1xf32>
    %51 = arith.subf %50, %47 : vector<8x1xf32>
    %52 = vector.broadcast %51 : vector<8x1xf32> to vector<8x8xf32>
    %53 = arith.mulf %52, %37 : vector<8x8xf32>
    %54 = arith.addf %49, %53 : vector<8x8xf32>
    %c4_i32 = arith.constant 4 : i32
    %55 = arith.index_cast %c4_i32 : i32 to index
    %c0_14 = arith.constant 0 : index
    %56 = vector.load %arg3[%55, %c0_14] : memref<7x8xf32, #tpu.memory_space<vmem>>, vector<1x8xf32>
    %cst_15 = arith.constant dense<0.000000e+00> : vector<8x8xf32>
    %57 = tpu.matmul %54, %2, %cst_15 {dimension_numbers = #tpu.dot_dimension_numbers<[1], [0], [0], [1], [0, 0, 1, 1], [], []>} : vector<8x8xf32>, vector<8x8xf32>, vector<8x8xf32> -> vector<8x8xf32>
    %58 = vector.broadcast %56 : vector<1x8xf32> to vector<8x8xf32>
    %59 = arith.addf %58, %57 : vector<8x8xf32>
    %60 = math.tanh %59 : vector<8x8xf32>
    %61 = vector.broadcast %c4_i32 : i32 to vector<8x1xi32>
    %62 = arith.cmpi slt, %0, %61 : vector<8x1xi32>
    %63 = arith.extui %62 : vector<8x1xi1> to vector<8x1xi32>
    %64 = arith.sitofp %63 : vector<8x1xi32> to vector<8x1xf32>
    %65 = vector.broadcast %64 : vector<8x1xf32> to vector<8x8xf32>
    %66 = arith.mulf %65, %60 : vector<8x8xf32>
    %cst_16 = arith.constant 1.000000e+00 : f32
    %67 = vector.broadcast %cst_16 : f32 to vector<8x1xf32>
    %68 = arith.subf %67, %64 : vector<8x1xf32>
    %69 = vector.broadcast %68 : vector<8x1xf32> to vector<8x8xf32>
    %70 = arith.mulf %69, %54 : vector<8x8xf32>
    %71 = arith.addf %66, %70 : vector<8x8xf32>
    %c5_i32 = arith.constant 5 : i32
    %72 = arith.index_cast %c5_i32 : i32 to index
    %c0_17 = arith.constant 0 : index
    %73 = vector.load %arg3[%72, %c0_17] : memref<7x8xf32, #tpu.memory_space<vmem>>, vector<1x8xf32>
    %cst_18 = arith.constant dense<0.000000e+00> : vector<8x8xf32>
    %74 = tpu.matmul %71, %2, %cst_18 {dimension_numbers = #tpu.dot_dimension_numbers<[1], [0], [0], [1], [0, 0, 1, 1], [], []>} : vector<8x8xf32>, vector<8x8xf32>, vector<8x8xf32> -> vector<8x8xf32>
    %75 = vector.broadcast %73 : vector<1x8xf32> to vector<8x8xf32>
    %76 = arith.addf %75, %74 : vector<8x8xf32>
    %77 = math.tanh %76 : vector<8x8xf32>
    %78 = vector.broadcast %c5_i32 : i32 to vector<8x1xi32>
    %79 = arith.cmpi slt, %0, %78 : vector<8x1xi32>
    %80 = arith.extui %79 : vector<8x1xi1> to vector<8x1xi32>
    %81 = arith.sitofp %80 : vector<8x1xi32> to vector<8x1xf32>
    %82 = vector.broadcast %81 : vector<8x1xf32> to vector<8x8xf32>
    %83 = arith.mulf %82, %77 : vector<8x8xf32>
    %cst_19 = arith.constant 1.000000e+00 : f32
    %84 = vector.broadcast %cst_19 : f32 to vector<8x1xf32>
    %85 = arith.subf %84, %81 : vector<8x1xf32>
    %86 = vector.broadcast %85 : vector<8x1xf32> to vector<8x8xf32>
    %87 = arith.mulf %86, %71 : vector<8x8xf32>
    %88 = arith.addf %83, %87 : vector<8x8xf32>
    %c6_i32 = arith.constant 6 : i32
    %89 = arith.index_cast %c6_i32 : i32 to index
    %c0_20 = arith.constant 0 : index
    %90 = vector.load %arg3[%89, %c0_20] : memref<7x8xf32, #tpu.memory_space<vmem>>, vector<1x8xf32>
    %cst_21 = arith.constant dense<0.000000e+00> : vector<8x8xf32>
    %91 = tpu.matmul %88, %2, %cst_21 {dimension_numbers = #tpu.dot_dimension_numbers<[1], [0], [0], [1], [0, 0, 1, 1], [], []>} : vector<8x8xf32>, vector<8x8xf32>, vector<8x8xf32> -> vector<8x8xf32>
    %92 = vector.broadcast %90 : vector<1x8xf32> to vector<8x8xf32>
    %93 = arith.addf %92, %91 : vector<8x8xf32>
    %94 = math.tanh %93 : vector<8x8xf32>
    %95 = vector.broadcast %c6_i32 : i32 to vector<8x1xi32>
    %96 = arith.cmpi slt, %0, %95 : vector<8x1xi32>
    %97 = arith.extui %96 : vector<8x1xi1> to vector<8x1xi32>
    %98 = arith.sitofp %97 : vector<8x1xi32> to vector<8x1xf32>
    %99 = vector.broadcast %98 : vector<8x1xf32> to vector<8x8xf32>
    %100 = arith.mulf %99, %94 : vector<8x8xf32>
    %cst_22 = arith.constant 1.000000e+00 : f32
    %101 = vector.broadcast %cst_22 : f32 to vector<8x1xf32>
    %102 = arith.subf %101, %98 : vector<8x1xf32>
    %103 = vector.broadcast %102 : vector<8x1xf32> to vector<8x8xf32>
    %104 = arith.mulf %103, %88 : vector<8x8xf32>
    %105 = arith.addf %100, %104 : vector<8x8xf32>
    %c6_i32_23 = arith.constant 6 : i32
    %c1_i32_24 = arith.constant 1 : i32
    %106 = vector.broadcast %c1_i32_24 : i32 to vector<8x1xi32>
    %107 = arith.addi %0, %106 : vector<8x1xi32>
    %c7_i32 = arith.constant 7 : i32
    %108 = vector.broadcast %c7_i32 : i32 to vector<8x1xi32>
    %109 = arith.cmpi sge, %107, %108 : vector<8x1xi32>
    %110 = arith.extui %109 : vector<8x1xi1> to vector<8x1xi32>
    %111 = arith.sitofp %110 : vector<8x1xi32> to vector<8x1xf32>
    %c0_25 = arith.constant 0 : index
    %c0_26 = arith.constant 0 : index
    %112 = vector.load %arg5[%c0_25, %c0_26] : memref<1x8xf32, #tpu.memory_space<vmem>>, vector<1x8xf32>
    %113 = vector.broadcast %111 : vector<8x1xf32> to vector<8x8xf32>
    %114 = vector.broadcast %112 : vector<1x8xf32> to vector<8x8xf32>
    %115 = arith.mulf %113, %114 : vector<8x8xf32>
    %cst_27 = arith.constant 1.000000e+00 : f32
    %116 = vector.broadcast %cst_27 : f32 to vector<8x1xf32>
    %117 = arith.subf %116, %111 : vector<8x1xf32>
    %118 = vector.broadcast %117 : vector<8x1xf32> to vector<8x8xf32>
    %119 = arith.mulf %118, %105 : vector<8x8xf32>
    %120 = arith.addf %115, %119 : vector<8x8xf32>
    %c0_28 = arith.constant 0 : index
    %c0_29 = arith.constant 0 : index
    %121 = vector.load %arg6[%c0_28, %c0_29] : memref<8x32xf32, #tpu.memory_space<vmem>>, vector<8x32xf32>
    %cst_30 = arith.constant dense<0.000000e+00> : vector<8x32xf32>
    %122 = tpu.matmul %1, %121, %cst_30 {dimension_numbers = #tpu.dot_dimension_numbers<[1], [0], [0], [1], [0, 0, 1, 1], [], []>} : vector<8x8xf32>, vector<8x32xf32>, vector<8x32xf32> -> vector<8x32xf32>
    %123 = tpu.concatenate %120, %120, %120, %120 in 1 : vector<8x8xf32>, vector<8x8xf32>, vector<8x8xf32>, vector<8x8xf32> -> vector<8x32xf32>
    %124 = arith.mulf %122, %123 : vector<8x32xf32>
    %c0_31 = arith.constant 0 : index
    %c0_32 = arith.constant 0 : index
    %125 = vector.load %arg7[%c0_31, %c0_32] : memref<32x4xf32, #tpu.memory_space<vmem>>, vector<32x4xf32>
    %cst_33 = arith.constant dense<0.000000e+00> : vector<8x4xf32>
    %126 = tpu.matmul %124, %125, %cst_33 {dimension_numbers = #tpu.dot_dimension_numbers<[1], [0], [0], [1], [0, 0, 1, 1], [], []>} : vector<8x32xf32>, vector<32x4xf32>, vector<8x4xf32> -> vector<8x4xf32>
    %c0_34 = arith.constant 0 : index
    %c0_35 = arith.constant 0 : index
    %127 = vector.load %arg8[%c0_34, %c0_35] : memref<1x4xf32, #tpu.memory_space<vmem>>, vector<1x4xf32>
    %128 = vector.broadcast %127 : vector<1x4xf32> to vector<8x4xf32>
    %129 = arith.addf %126, %128 : vector<8x4xf32>
    %c0_36 = arith.constant 0 : index
    %c0_37 = arith.constant 0 : index
    %130 = vector.load %arg9[%c0_36, %c0_37] : memref<8x4xf32, #tpu.memory_space<vmem>>, vector<8x4xf32>
    tpu.vector_store %arg9[%c0_36, %c0_37], %129 {strides = array<i32>} : memref<8x4xf32, #tpu.memory_space<vmem>>, vector<8x4xf32>,
    return
  }
  func.func @transform_0(%arg0: i32) -> (i32, i32) {
    %c0_i32 = arith.constant 0 : i32
    %c0_i32_0 = arith.constant 0 : i32
    return %arg0, %c0_i32 : i32, i32
  }
  func.func @transform_1(%arg0: i32) -> (i32, i32) {
    %c0_i32 = arith.constant 0 : i32
    %c0_i32_0 = arith.constant 0 : i32
    return %arg0, %c0_i32 : i32, i32
  }
  func.func @transform_2(%arg0: i32) -> (i32, i32) {
    %c0_i32 = arith.constant 0 : i32
    %c0_i32_0 = arith.constant 0 : i32
    %c0_i32_1 = arith.constant 0 : i32
    return %c0_i32, %c0_i32_0 : i32, i32
  }
  func.func @transform_3(%arg0: i32) -> (i32, i32) {
    %c0_i32 = arith.constant 0 : i32
    %c0_i32_0 = arith.constant 0 : i32
    %c0_i32_1 = arith.constant 0 : i32
    return %c0_i32, %c0_i32_0 : i32, i32
  }
  func.func @transform_4(%arg0: i32) -> (i32, i32) {
    %c0_i32 = arith.constant 0 : i32
    %c0_i32_0 = arith.constant 0 : i32
    %c0_i32_1 = arith.constant 0 : i32
    return %c0_i32, %c0_i32_0 : i32, i32
  }
  func.func @transform_5(%arg0: i32) -> (i32, i32) {
    %c0_i32 = arith.constant 0 : i32
    %c0_i32_0 = arith.constant 0 : i32
    %c0_i32_1 = arith.constant 0 : i32
    return %c0_i32, %c0_i32_0 : i32, i32
  }
  func.func @transform_6(%arg0: i32) -> (i32, i32) {
    %c0_i32 = arith.constant 0 : i32
    %c0_i32_0 = arith.constant 0 : i32
    %c0_i32_1 = arith.constant 0 : i32
    return %c0_i32, %c0_i32_0 : i32, i32
  }
  func.func @transform_7(%arg0: i32) -> (i32, i32) {
    %c0_i32 = arith.constant 0 : i32
    %c0_i32_0 = arith.constant 0 : i32
    %c0_i32_1 = arith.constant 0 : i32
    return %c0_i32, %c0_i32_0 : i32, i32
  }
  func.func @transform_8(%arg0: i32) -> (i32, i32) {
    %c0_i32 = arith.constant 0 : i32
    %c0_i32_0 = arith.constant 0 : i32
    return %arg0, %c0_i32 : i32, i32
  }
}

</mosaic_0001>

<bundles_post_ra>
// kernel: custom-call.3
= control target key start
LH: loop header
LB: loop body
LE: loop exit
PB: predicated region body
PF: predicated region fallthrough
CT: control target
= control target key end

     0   :  { %s6_s0 = inlined_call_operand.vmem [shape: f32[6,8], index: 0, kind: output, shape index: {}]  }

// kernel: custom-call
= control target key start
LH: loop header
LB: loop body
LE: loop exit
PB: predicated region body
PF: predicated region fallthrough
CT: control target
= control target key end

     0   :  { %s6_s0 = inlined_call_operand.vmem [shape: f32[8], index: 0, kind: output, shape index: {}]  }

// kernel: _forward_impl.1
= control target key start
LH: loop header
LB: loop body
LE: loop exit
PB: predicated region body
PF: predicated region fallthrough
CT: control target
= control target key end

     0   :  { %v444_v1 = vmov 0   ;;  %v445_v3 = vmov 0.0   ;;  %vm33_vm7 = vcmask 64512   ;;  %s448_s24 = smov 8   ;;  %vm354_vm8 = vcmask 130048   ;;  %s552_s3 = inlined_call_operand.vmem [shape: f32[8,8], index: 3, kind: input, shape index: {}]   ;;  %s553_s0 = inlined_call_operand.vmem [shape: s32[8,1], index: 0, kind: input, shape index: {}]   ;;  %s554_s2 = inlined_call_operand.vmem [shape: f32[7,8], index: 2, kind: input, shape index: {}]   ;;  %s555_s4 = inlined_call_operand.vmem [shape: f32[1,8], index: 4, kind: input, shape index: {}]   ;;  %s556_s5 = inlined_call_operand.vmem [shape: f32[8,32], index: 5, kind: input, shape index: {}]   ;;  %s557_s1 = inlined_call_operand.vmem [shape: f32[8,8], index: 1, kind: input, shape index: {}]   ;;  %s558_s7 = inlined_call_operand.vmem [shape: f32[1,4], index: 7, kind: input, shape index: {}]   ;;  %s559_s6 = inlined_call_operand.vmem [shape: f32[32,4], index: 6, kind: input, shape index: {}]   ;;  %s560_s8 = inlined_call_operand.vmem [shape: f32[8,4], index: 8, kind: output, shape index: {}]  }
   0x1   :  { %v31_v0 = vld [vmem:[%s552_s3] sm:$0xff]  ;;  %416 = vset.pattern.permute.xlu0 %v444_v1  ;;  %417 = vset.pattern.permute.xlu1 %v444_v1  ;;  %vm356_vm9 = vcmask 195584   ;;  %vm367_vm10 = vcmask 261120   ;;  %vm391_vm11 = vcmask 31744  }
   0x2   :  { %v29_v2 = vld [vmem:[%s553_s0] sm:$0xff]  ;;  %52 = vmatpush.msra.mxu0 %v31_v0  ;;  %96 = vmatpush.msra.mxu1 %v31_v0 }
   0x3   :  { %vm60_vm0 = vcmp.lt.s32.totalorder %v29_v2, 1  ;;  %vm104_vm1 = vcmp.lt.s32.totalorder %v29_v2, 2  ;;  %53 = vmatmul.f32.vlgmr.msra.gmra.mxu0 %v445_v3  ;;  %418 = vset.pattern.permute.xlu2 %v444_v1  ;;  %vm192_vm2 = vcmp.lt.s32.totalorder %v29_v2, 4  ;;  %vm236_vm3 = vcmp.lt.s32.totalorder %v29_v2, 5  ;;  %v424_v19 = vld [vmem:[%s554_s2 + $0x1] ss:$0 sm:$0xff] }
   0x4   :  { %v397_v4 = vsel %vm60_vm0, 1.0, %v445_v3  ;;  %v399_v5 = vsel %vm104_vm1, 1.0, %v445_v3  ;;  %140 = vmatpush.msra.mxu2 %v31_v0  ;;  %184 = vmatpush.msra.mxu3 %v31_v0  ;;  %v403_v8 = vsel %vm192_vm2, 1.0, %v445_v3  ;;  %v405_v10 = vsel %vm236_vm3, 1.0, %v445_v3  ;;  %v425_v30 = vld [vmem:[%s554_s2 + $0x2] ss:$0 sm:$0xff] }
   0x5   :  { %65 = vperm.xlu0 %416, %v397_v4   ;;  %109 = vperm.xlu1 %417, %v399_v5   ;;  %v69_v6 = vsub.f32 1.0, %v397_v4  ;;  %v113_v7 = vsub.f32 1.0, %v399_v5  ;;  %v201_v9 = vsub.f32 1.0, %v403_v8  ;;  %v297_v11 = vadd.s32 1, %v29_v2  ;;  %v427_v39 = vld [vmem:[%s554_s2 + $0x3] ss:$0 sm:$0xff] }
   0x6   :  { %228 = vmatpush.msrb.mxu0 %v31_v0  ;;  %272 = vmatpush.msrb.mxu1 %v31_v0  ;;  %v245_v12 = vsub.f32 1.0, %v405_v10  ;;  %vm280_vm5 = vcmp.lt.s32.totalorder %v29_v2, 6  ;;  %vm148_vm6 = vcmp.lt.s32.totalorder %v29_v2, 3  ;;  %v428_v47 = vld [vmem:[%s554_s2 + $0x4] ss:$0 sm:$0xff] }
   0x7   :  { %vm298_vm4 = vcmp.ge.s32.totalorder %v297_v11, 7  ;;  %v407_v15 = vsel %vm280_vm5, 1.0, %v445_v3  ;;  %v401_v16 = vsel %vm148_vm6, 1.0, %v445_v3  ;;  %v319_v56 = vld [vmem:[%s556_s5] sm:$0xff] }
   0x8   :  { %v408_v13 = vsel %vm298_vm4, 1.0, %v445_v3  ;;  %153 = vperm.xlu2 %418, %v401_v16   ;;  %v157_v18 = vsub.f32 1.0, %v401_v16  ;;  %v289_v28 = vsub.f32 1.0, %v407_v15  ;;  %338 = vmatpush.msrb.mxu2 %v319_v56  ;;  %v429_v57 = vld [vmem:[%s554_s2 + $0x5] ss:$0 sm:$0xff] }
   0x9   :  { %v311_v14 = vsub.f32 1.0, %v408_v13  ;;  %v419_v17 = vpack.i.bf16 %v408_v13, %v407_v15  ;;  %v30_v2 = vld [vmem:[%s557_s1] sm:$0xff]  ;;  %s446_s1 = smov 24  }
   0xa   :  { %v430_v3 = vld [vmem:[%s554_s2 + $0x6] ss:$0 sm:$0xff]  ;;  %s447_s2 = smov 16  }
   0xd   :  { %72 = vperm.xlu0 %416, %v69_v6   ;;  %116 = vperm.xlu1 %417, %v113_v7  }
  0x10   :  { %160 = vperm.xlu2 %418, %v157_v18  }
  0x15   :  { %197 = vperm.xlu0 %416, %v403_v8   ;;  %204 = vperm.xlu1 %417, %v201_v9  }
  0x18   :  { %241 = vperm.xlu2 %418, %v405_v10   ;;  %v426_v10 = vld [vmem:[%s555_s4] ss:$0 sm:$0xff] }
  0x1d   :  { %248 = vperm.xlu0 %416, %v245_v12   ;;  %420 = vperm.xlu1 %417, %v419_v17  }
  0x20   :  { %292 = vperm.xlu2 %418, %v289_v28  }
  0x25   :  { %314 = vperm.xlu0 %416, %v311_v14  }
  0x62   :  { %v154_v38 = vpop.permute.xlu2 %153 }
  0x6a   :  { %v161_v42 = vpop.permute.xlu2 %160 }
  0x72   :  { %v242_v62 = vpop.permute.xlu2 %241 }
  0x77   :  { %v66_v20 = vpop.permute.xlu0 %65  ;;  %v110_v29 = vpop.permute.xlu1 %109 }
  0x7a   :  { %v293_v9 = vpop.permute.xlu2 %292 }
  0x7f   :  { %v73_v24 = vpop.permute.xlu0 %72  ;;  %v117_v33 = vpop.permute.xlu1 %116 }
  0x80   :  { %v54_v21 = vpop.f32.mrf.mxu0  ;;  %v75_v25 = vmul.f32 0.0, %v73_v24 }
  0x81   :  { %v58_v22 = vadd.f32 %v424_v19, %v54_v21  ;;  %v362_v19 = vld [vmem:[%s559_s6 + $0x18] sm:$0xff]  ;;  %v360_v21 = vld [vmem:[%s559_s6 + $0x8] sm:$0xff] }
  0x82   :  { %383 = vmatpush.msrb.mxu3 %v362_v19 }
  0x83   :  { %432 = vtanh.f32 %v58_v22  ;;  %v359_v22 = vld [vmem:[%s559_s6] sm:$0xff] }
  0x87   :  { %v198_v51 = vpop.permute.xlu0 %197  ;;  %v205_v52 = vpop.permute.xlu1 %204 }
  0x89   :  { %v433_v23 = vpop.eup %432 }
  0x8a   :  { %v68_v26 = vmul.f32 %v433_v23, %v66_v20  ;;  %v361_v20 = vld [vmem:[%s559_s6 + $0x10] sm:$0xff] }
  0x8b   :  { %384 = vmatpush.msrb.mxu3 %v361_v20 }
  0x8c   :  { %v76_v27 = vadd.f32 %v75_v25, %v68_v26 }
  0x8d   :  { %385 = vmatpush.msrb.mxu3 %v360_v21 }
  0x8e   :  { %398 = vmatmul.msk.f32.vlgmr.msra.gmra.mxu1 %vm33_vm7, %v76_v27  ;;  %v119_v35 = vmul.f32 %v117_v33, %v76_v27 }
  0x8f   :  { %v249_v61 = vpop.permute.xlu0 %248  ;;  %v421_v6 = vpop.permute.xlu1 %420  ;;  %386 = vmatpush.msrb.mxu3 %v359_v22 }
  0x90   :  { %v422_v7 = vunpack.i.l.bf16 %v421_v6  ;;  %v423_v11 = vunpack.i.h.bf16 %v421_v6 }
  0x92   :  { %v310_v16 = vmul.f32 %v426_v10, %v423_v11 }
  0x97   :  { %v315_v15 = vpop.permute.xlu0 %314 }
 0x10b   :  { %v98_v31 = vpop.f32.mrf.mxu1 }
 0x10c   :  { %v102_v32 = vadd.f32 %v425_v30, %v98_v31  ;;  %v431_v31 = vld [vmem:[%s558_s7] ss:$0 sm:$0xff] }
 0x10e   :  { %434 = vtanh.f32 %v102_v32 }
 0x114   :  { %v435_v34 = vpop.eup %434 }
 0x115   :  { %v112_v36 = vmul.f32 %v435_v34, %v110_v29 }
 0x117   :  { %v120_v37 = vadd.f32 %v119_v35, %v112_v36 }
 0x119   :  { %400 = vmatmul.msk.f32.vlgmr.msra.gmra.mxu2 %vm33_vm7, %v120_v37  ;;  %v163_v44 = vmul.f32 %v161_v42, %v120_v37 }
 0x121   :  { %409 = vmatmul.msk.f32.vlgmr.msrb.gmra.mxu2 %vm33_vm7, %v30_v2 }
 0x19c   :  { %v142_v40 = vpop.f32.mrf.mxu2 }
 0x19d   :  { %v146_v41 = vadd.f32 %v427_v39, %v142_v40 }
 0x19f   :  { %436 = vtanh.f32 %v146_v41 }
 0x1a4   :  { %v340_v26 = vpop.f32.mrf.mxu2 }
 0x1a5   :  { %v437_v43 = vpop.eup %436 }
 0x1a6   :  { %v156_v45 = vmul.f32 %v437_v43, %v154_v38 }
 0x1a8   :  { %v164_v46 = vadd.f32 %v163_v44, %v156_v45 }
 0x1aa   :  { %402 = vmatmul.msk.f32.vlgmr.msra.gmra.mxu3 %vm33_vm7, %v164_v46  ;;  %v207_v53 = vmul.f32 %v205_v52, %v164_v46 }
 0x22d   :  { %v186_v48 = vpop.f32.mrf.mxu3 }
 0x22e   :  { %v190_v49 = vadd.f32 %v428_v47, %v186_v48 }
 0x230   :  { %438 = vtanh.f32 %v190_v49 }
 0x236   :  { %v439_v50 = vpop.eup %438 }
 0x237   :  { %v200_v54 = vmul.f32 %v439_v50, %v198_v51 }
 0x239   :  { %v208_v55 = vadd.f32 %v207_v53, %v200_v54 }
 0x23b   :  { %404 = vmatmul.msk.f32.vlgmr.msrb.gmra.mxu0 %vm33_vm7, %v208_v55  ;;  %v251_v0 = vmul.f32 %v249_v61, %v208_v55 }
 0x2b8   :  { %v230_v58 = vpop.f32.mrf.mxu0 }
 0x2b9   :  { %v234_v59 = vadd.f32 %v429_v57, %v230_v58 }
 0x2bb   :  { %440 = vtanh.f32 %v234_v59 }
 0x2c1   :  { %v441_v60 = vpop.eup %440 }
 0x2c2   :  { %v244_v63 = vmul.f32 %v441_v60, %v242_v62 }
 0x2c4   :  { %v252_v1 = vadd.f32 %v251_v0, %v244_v63 }
 0x2c6   :  { %406 = vmatmul.msk.f32.vlgmr.msrb.gmra.mxu1 %vm33_vm7, %v252_v1  ;;  %v295_v12 = vmul.f32 %v293_v9, %v252_v1 }
 0x343   :  { %v274_v4 = vpop.f32.mrf.mxu1 }
 0x344   :  { %v278_v5 = vadd.f32 %v430_v3, %v274_v4 }
 0x346   :  { %442 = vtanh.f32 %v278_v5 }
 0x34c   :  { %v443_v8 = vpop.eup %442 }
 0x34d   :  { %v288_v13 = vmul.f32 %v443_v8, %v422_v7 }
 0x34f   :  { %v296_v14 = vadd.f32 %v295_v12, %v288_v13 }
 0x351   :  { %v317_v17 = vmul.f32 %v315_v15, %v296_v14 }
 0x353   :  { %v318_v18 = vadd.f32 %v317_v17, %v310_v16 }
 0x355   :  { %350 = vrot.lane.b32.xlu0 %v318_v18, %s446_s1  ;;  %347 = vrot.lane.b32.xlu2 %v318_v18, %s447_s2 }
 0x356   :  { %344 = vrot.lane.b32.xlu1 %v318_v18, %s448_s24 }
 0x3af   :  { %v348_v24 = vpop.permute.xlu2 %347 }
 0x3c7   :  { %v351_v27 = vpop.permute.xlu0 %350 }
 0x3c8   :  { %v345_v23 = vpop.permute.xlu1 %344 }
 0x3c9   :  { %v353_v25 = vsel %vm33_vm7, %v318_v18, %v345_v23 }
 0x3ca   :  { %v355_v28 = vsel %vm354_vm8, %v353_v25, %v348_v24 }
 0x3cb   :  { %v357_v29 = vsel %vm356_vm9, %v355_v28, %v351_v27 }
 0x3cc   :  { %v358_v30 = vmul.f32 %v357_v29, %v340_v26 }
 0x3ce   :  { %410 = vmatmul.msk.f32.vlgmr.msrb.gmra.mxu3 %vm367_vm10, %v358_v30 }
 0x451   :  { %v388_v32 = vpop.f32.mrf.mxu3 }
 0x452   :  { %v389_v33 = vadd.f32 %v431_v31, %v388_v32 }
 0x454   :  { %392 = vst.msk [vmem:[%s560_s8] sm:$0xff] %vm391_vm11, %v389_v33 }

</bundles_post_ra>
